<compile_context>
chip_gen: v7x
topology: tpu7x:2x2x1
jax: 0.10.0
libtpu: 0.0.40
codegen_flags: <defaults>
</compile_context>

<pallas_src>
import jax
import jax.numpy as jnp
from jax.experimental import pallas as pl
from jax.experimental.pallas import tpu as pltpu

BN_EPS = 1e-5


# ---------------------------------------------------------------------------
# In-kernel helpers (traced inside the Pallas kernel)
# ---------------------------------------------------------------------------
def _softplus(x):
    # torch.nn.functional.softplus with default beta=1, threshold=20
    return jnp.where(x > 20.0, x, jnp.log1p(jnp.exp(jnp.minimum(x, 20.0))))


def _batchnorm_train(y, gamma, beta):
    # BatchNorm1d, training mode: batch mean / biased batch variance.
    # Single-pass statistics: var = E[y^2] - E[y]^2.
    mean = jnp.mean(y, axis=0, keepdims=True)
    mean_sq = jnp.mean(y * y, axis=0, keepdims=True)
    var = mean_sq - mean * mean
    return (y - mean) * jax.lax.rsqrt(var + BN_EPS) * gamma + beta


# ---------------------------------------------------------------------------
# Fused Encoder kernel builder
# ---------------------------------------------------------------------------
def _make_encoder_kernel(num_hidden, z_dim):
    """Builds the fused kernel for `num_hidden = len(h_dim)` hidden widths."""
    # inputs: x, eps, W0, b0, [gamma, beta, W, b] * (num_hidden-1),
    #         gamma_last, beta_last, Wmlv, bmlv
    n_inputs = 2 + 2 + 4 * (num_hidden - 1) + 2 + 2

    def kernel(*refs):
        in_refs = refs[:n_inputs]
        z_ref, mu_ref, lv_ref = refs[n_inputs:]
        it = iter(in_refs)

        x = next(it)[...]
        eps = next(it)[...]

        # first_dense (single-input case)
        w0 = next(it)[...]
        b0 = next(it)[...]
        h = jnp.dot(x, w0, preferred_element_type=jnp.float32) + b0

        # hidden blocks: ReLU -> BatchNorm1d -> Linear
        for _ in range(num_hidden - 1):
            g = next(it)[...]
            be = next(it)[...]
            w = next(it)[...]
            b = next(it)[...]
            h = jnp.maximum(h, 0.0)
            h = _batchnorm_train(h, g, be)
            h = jnp.dot(h, w, preferred_element_type=jnp.float32) + b

        # trailing ReLU -> BatchNorm1d
        g = next(it)[...]
        be = next(it)[...]
        h = jnp.maximum(h, 0.0)
        h = _batchnorm_train(h, g, be)

        # GaussianSample: fused [mu || log_var] projection (one MXU matmul)
        wmlv = next(it)[...]
        bmlv = next(it)[...]
        mlv = jnp.dot(h, wmlv, preferred_element_type=jnp.float32) + bmlv
        mu = mlv[:, :z_dim]
        log_var = _softplus(mlv[:, z_dim:])
        z = mu + jnp.exp(0.5 * log_var) * eps

        z_ref[...] = z
        mu_ref[...] = mu
        lv_ref[...] = log_var

    return kernel, n_inputs


def encoder_forward(x, eps, params):
    """Fused Encoder.forward. Returns (z, mu, log_var) like the torch module."""
    h_dim = params["h_dim"]
    z_dim = params["z_dim"]
    kernel, n_inputs = _make_encoder_kernel(len(h_dim), z_dim)

    args = [x, eps, params["W0"], params["b0"]]
    for blk in params["blocks"]:
        args += [blk["gamma"], blk["beta"], blk["W"], blk["b"]]
    args += [params["gamma_last"], params["beta_last"],
             params["Wmlv"], params["bmlv"]]
    assert len(args) == n_inputs

    B = x.shape[0]
    out_shape = (
        jax.ShapeDtypeStruct((B, z_dim), jnp.float32),  # z
        jax.ShapeDtypeStruct((B, z_dim), jnp.float32),  # mu
        jax.ShapeDtypeStruct((B, z_dim), jnp.float32),  # log_var
    )
    return pl.pallas_call(
        kernel,
        out_shape=out_shape,
        in_specs=[pl.BlockSpec(memory_space=pltpu.MemorySpace.VMEM)
                  for _ in args],
        out_specs=tuple(pl.BlockSpec(memory_space=pltpu.MemorySpace.VMEM)
                        for _ in range(3)),
    )(*args)


# ---------------------------------------------------------------------------
# Parameter construction (deterministic; linear weights stored as
# (in_features, out_features), i.e. pre-transposed relative to nn.Linear).
# ---------------------------------------------------------------------------
def init_params(key, x_dim, h_dim, z_dim):
    L = len(h_dim)
    keys = iter(jax.random.split(key, 4 * L + 8))

    def lin(fi, fo):
        std = (2.0 / (fi + fo)) ** 0.5
        w = std * jax.random.normal(next(keys), (fi, fo), jnp.float32)
        b = jnp.zeros((1, fo), jnp.float32)
        return w, b

    def bn(d):
        return jnp.ones((1, d), jnp.float32), jnp.zeros((1, d), jnp.float32)

    # first_dense (single-input case).
    # TODO(synk): the x_dim-as-list multi-input path (sum of several
    #             first_dense projections) is not wired up here.
    W0, b0 = lin(x_dim, h_dim[0])

    blocks = []
    for i in range(L - 1):
        g, be = bn(h_dim[i])
        w, b = lin(h_dim[i], h_dim[i + 1])
        blocks.append(dict(gamma=g, beta=be, W=w, b=b))

    gamma_last, beta_last = bn(h_dim[-1])

    # GaussianSample: pack the mu and log_var projections side-by-side.
    Wmu, bmu = lin(h_dim[-1], z_dim)
    Wlv, blv = lin(h_dim[-1], z_dim)
    Wmlv = jnp.concatenate([Wmu, Wlv], axis=1)
    bmlv = jnp.concatenate([bmu, blv], axis=1)

    return dict(h_dim=list(h_dim), z_dim=z_dim,
                W0=W0, b0=b0, blocks=blocks,
                gamma_last=gamma_last, beta_last=beta_last,
                Wmlv=Wmlv, bmlv=bmlv)


# ---------------------------------------------------------------------------
if __name__ == "__main__":
    X_DIM = 32
    H_DIM = [64, 32]
    Z_DIM = 16
    B = 8

    key = jax.random.PRNGKey(0)
    k_param, k_x, k_eps = jax.random.split(key, 3)

    params = init_params(k_param, X_DIM, H_DIM, Z_DIM)
    x = jax.random.uniform(k_x, (B, X_DIM), jnp.float32)
    # reparametrization noise (torch.randn equivalent, supplied explicitly)
    eps = jax.random.normal(k_eps, (B, Z_DIM), jnp.float32)

    fwd = jax.jit(lambda xx, ee: encoder_forward(xx, ee, params))
    z, mu, log_var = fwd(x, eps)
    jax.block_until_ready((z, mu, log_var))

    assert z.shape == (B, Z_DIM), z.shape
    assert mu.shape == (B, Z_DIM), mu.shape
    assert log_var.shape == (B, Z_DIM), log_var.shape
    assert z.dtype == mu.dtype == log_var.dtype == jnp.float32
    assert bool(jnp.all(log_var >= 0.0))       # softplus output is non-negative
    assert bool(jnp.all(jnp.isfinite(z)))
    assert bool(jnp.all(jnp.isfinite(mu)))
    print("KERNEL_OK")
</pallas_src>

<mosaic_0001>
module attributes {stable_mosaic.version = 11 : i64} {
  func.func @kernel(%arg0: memref<8x32xf32, #tpu.memory_space<vmem>>, %arg1: memref<8x16xf32, #tpu.memory_space<vmem>>, %arg2: memref<32x64xf32, #tpu.memory_space<vmem>>, %arg3: memref<1x64xf32, #tpu.memory_space<vmem>>, %arg4: memref<1x64xf32, #tpu.memory_space<vmem>>, %arg5: memref<1x64xf32, #tpu.memory_space<vmem>>, %arg6: memref<64x32xf32, #tpu.memory_space<vmem>>, %arg7: memref<1x32xf32, #tpu.memory_space<vmem>>, %arg8: memref<1x32xf32, #tpu.memory_space<vmem>>, %arg9: memref<1x32xf32, #tpu.memory_space<vmem>>, %arg10: memref<32x32xf32, #tpu.memory_space<vmem>>, %arg11: memref<1x32xf32, #tpu.memory_space<vmem>>, %arg12: memref<8x16xf32, #tpu.memory_space<vmem>>, %arg13: memref<8x16xf32, #tpu.memory_space<vmem>>, %arg14: memref<8x16xf32, #tpu.memory_space<vmem>>) attributes {dimension_semantics = [], scalar_prefetch = 0 : i64, scratch_operands = 0 : i64, tpu.core_type = #tpu.core_type<tc>} {
    %c0 = arith.constant 0 : index
    %c0_0 = arith.constant 0 : index
    %0 = vector.load %arg0[%c0, %c0_0] : memref<8x32xf32, #tpu.memory_space<vmem>>, vector<8x32xf32>
    %c0_1 = arith.constant 0 : index
    %c0_2 = arith.constant 0 : index
    %1 = vector.load %arg1[%c0_1, %c0_2] : memref<8x16xf32, #tpu.memory_space<vmem>>, vector<8x16xf32>
    %c0_3 = arith.constant 0 : index
    %c0_4 = arith.constant 0 : index
    %2 = vector.load %arg2[%c0_3, %c0_4] : memref<32x64xf32, #tpu.memory_space<vmem>>, vector<32x64xf32>
    %c0_5 = arith.constant 0 : index
    %c0_6 = arith.constant 0 : index
    %3 = vector.load %arg3[%c0_5, %c0_6] : memref<1x64xf32, #tpu.memory_space<vmem>>, vector<1x64xf32>
    %cst = arith.constant dense<0.000000e+00> : vector<8x64xf32>
    %4 = tpu.matmul %0, %2, %cst {dimension_numbers = #tpu.dot_dimension_numbers<[1], [0], [0], [1], [0, 0, 1, 1], [], []>} : vector<8x32xf32>, vector<32x64xf32>, vector<8x64xf32> -> vector<8x64xf32>
    %5 = vector.broadcast %3 : vector<1x64xf32> to vector<8x64xf32>
    %6 = arith.addf %4, %5 : vector<8x64xf32>
    %c0_7 = arith.constant 0 : index
    %c0_8 = arith.constant 0 : index
    %7 = vector.load %arg4[%c0_7, %c0_8] : memref<1x64xf32, #tpu.memory_space<vmem>>, vector<1x64xf32>
    %c0_9 = arith.constant 0 : index
    %c0_10 = arith.constant 0 : index
    %8 = vector.load %arg5[%c0_9, %c0_10] : memref<1x64xf32, #tpu.memory_space<vmem>>, vector<1x64xf32>
    %c0_11 = arith.constant 0 : index
    %c0_12 = arith.constant 0 : index
    %9 = vector.load %arg6[%c0_11, %c0_12] : memref<64x32xf32, #tpu.memory_space<vmem>>, vector<64x32xf32>
    %c0_13 = arith.constant 0 : index
    %c0_14 = arith.constant 0 : index
    %10 = vector.load %arg7[%c0_13, %c0_14] : memref<1x32xf32, #tpu.memory_space<vmem>>, vector<1x32xf32>
    %cst_15 = arith.constant 0.000000e+00 : f32
    %11 = vector.broadcast %cst_15 : f32 to vector<8x64xf32>
    %12 = arith.maximumf %6, %11 : vector<8x64xf32>
    %cst_16 = arith.constant dense<0.000000e+00> : vector<64xf32>
    %13 = vector.multi_reduction <add>, %12, %cst_16 [0] : vector<8x64xf32> to vector<64xf32>
    %14 = vector.shape_cast %13 : vector<64xf32> to vector<1x64xf32>
    %cst_17 = arith.constant 8.000000e+00 : f32
    %15 = vector.broadcast %cst_17 : f32 to vector<1x64xf32>
    %16 = arith.divf %14, %15 : vector<1x64xf32>
    %17 = arith.mulf %12, %12 : vector<8x64xf32>
    %cst_18 = arith.constant dense<0.000000e+00> : vector<64xf32>
    %18 = vector.multi_reduction <add>, %17, %cst_18 [0] : vector<8x64xf32> to vector<64xf32>
    %19 = vector.shape_cast %18 : vector<64xf32> to vector<1x64xf32>
    %cst_19 = arith.constant 8.000000e+00 : f32
    %20 = vector.broadcast %cst_19 : f32 to vector<1x64xf32>
    %21 = arith.divf %19, %20 : vector<1x64xf32>
    %22 = arith.mulf %16, %16 : vector<1x64xf32>
    %23 = arith.subf %21, %22 : vector<1x64xf32>
    %24 = vector.broadcast %16 : vector<1x64xf32> to vector<8x64xf32>
    %25 = arith.subf %12, %24 : vector<8x64xf32>
    %cst_20 = arith.constant 9.99999974E-6 : f32
    %26 = vector.broadcast %cst_20 : f32 to vector<1x64xf32>
    %27 = arith.addf %23, %26 : vector<1x64xf32>
    %28 = math.rsqrt %27 : vector<1x64xf32>
    %29 = vector.broadcast %28 : vector<1x64xf32> to vector<8x64xf32>
    %30 = arith.mulf %25, %29 : vector<8x64xf32>
    %31 = vector.broadcast %7 : vector<1x64xf32> to vector<8x64xf32>
    %32 = arith.mulf %30, %31 : vector<8x64xf32>
    %33 = vector.broadcast %8 : vector<1x64xf32> to vector<8x64xf32>
    %34 = arith.addf %32, %33 : vector<8x64xf32>
    %cst_21 = arith.constant dense<0.000000e+00> : vector<8x32xf32>
    %35 = tpu.matmul %34, %9, %cst_21 {dimension_numbers = #tpu.dot_dimension_numbers<[1], [0], [0], [1], [0, 0, 1, 1], [], []>} : vector<8x64xf32>, vector<64x32xf32>, vector<8x32xf32> -> vector<8x32xf32>
    %36 = vector.broadcast %10 : vector<1x32xf32> to vector<8x32xf32>
    %37 = arith.addf %35, %36 : vector<8x32xf32>
    %c0_22 = arith.constant 0 : index
    %c0_23 = arith.constant 0 : index
    %38 = vector.load %arg8[%c0_22, %c0_23] : memref<1x32xf32, #tpu.memory_space<vmem>>, vector<1x32xf32>
    %c0_24 = arith.constant 0 : index
    %c0_25 = arith.constant 0 : index
    %39 = vector.load %arg9[%c0_24, %c0_25] : memref<1x32xf32, #tpu.memory_space<vmem>>, vector<1x32xf32>
    %cst_26 = arith.constant 0.000000e+00 : f32
    %40 = vector.broadcast %cst_26 : f32 to vector<8x32xf32>
    %41 = arith.maximumf %37, %40 : vector<8x32xf32>
    %cst_27 = arith.constant dense<0.000000e+00> : vector<32xf32>
    %42 = vector.multi_reduction <add>, %41, %cst_27 [0] : vector<8x32xf32> to vector<32xf32>
    %43 = vector.shape_cast %42 : vector<32xf32> to vector<1x32xf32>
    %cst_28 = arith.constant 8.000000e+00 : f32
    %44 = vector.broadcast %cst_28 : f32 to vector<1x32xf32>
    %45 = arith.divf %43, %44 : vector<1x32xf32>
    %46 = arith.mulf %41, %41 : vector<8x32xf32>
    %cst_29 = arith.constant dense<0.000000e+00> : vector<32xf32>
    %47 = vector.multi_reduction <add>, %46, %cst_29 [0] : vector<8x32xf32> to vector<32xf32>
    %48 = vector.shape_cast %47 : vector<32xf32> to vector<1x32xf32>
    %cst_30 = arith.constant 8.000000e+00 : f32
    %49 = vector.broadcast %cst_30 : f32 to vector<1x32xf32>
    %50 = arith.divf %48, %49 : vector<1x32xf32>
    %51 = arith.mulf %45, %45 : vector<1x32xf32>
    %52 = arith.subf %50, %51 : vector<1x32xf32>
    %53 = vector.broadcast %45 : vector<1x32xf32> to vector<8x32xf32>
    %54 = arith.subf %41, %53 : vector<8x32xf32>
    %cst_31 = arith.constant 9.99999974E-6 : f32
    %55 = vector.broadcast %cst_31 : f32 to vector<1x32xf32>
    %56 = arith.addf %52, %55 : vector<1x32xf32>
    %57 = math.rsqrt %56 : vector<1x32xf32>
    %58 = vector.broadcast %57 : vector<1x32xf32> to vector<8x32xf32>
    %59 = arith.mulf %54, %58 : vector<8x32xf32>
    %60 = vector.broadcast %38 : vector<1x32xf32> to vector<8x32xf32>
    %61 = arith.mulf %59, %60 : vector<8x32xf32>
    %62 = vector.broadcast %39 : vector<1x32xf32> to vector<8x32xf32>
    %63 = arith.addf %61, %62 : vector<8x32xf32>
    %c0_32 = arith.constant 0 : index
    %c0_33 = arith.constant 0 : index
    %64 = vector.load %arg10[%c0_32, %c0_33] : memref<32x32xf32, #tpu.memory_space<vmem>>, vector<32x32xf32>
    %c0_34 = arith.constant 0 : index
    %c0_35 = arith.constant 0 : index
    %65 = vector.load %arg11[%c0_34, %c0_35] : memref<1x32xf32, #tpu.memory_space<vmem>>, vector<1x32xf32>
    %cst_36 = arith.constant dense<0.000000e+00> : vector<8x32xf32>
    %66 = tpu.matmul %63, %64, %cst_36 {dimension_numbers = #tpu.dot_dimension_numbers<[1], [0], [0], [1], [0, 0, 1, 1], [], []>} : vector<8x32xf32>, vector<32x32xf32>, vector<8x32xf32> -> vector<8x32xf32>
    %67 = vector.broadcast %65 : vector<1x32xf32> to vector<8x32xf32>
    %68 = arith.addf %66, %67 : vector<8x32xf32>
    %69 = vector.extract_strided_slice %68 {offsets = [0, 0], sizes = [8, 16], strides = [1, 1]} : vector<8x32xf32> to vector<8x16xf32>
    %70 = vector.extract_strided_slice %68 {offsets = [0, 16], sizes = [8, 16], strides = [1, 1]} : vector<8x32xf32> to vector<8x16xf32>
    %cst_37 = arith.constant 2.000000e+01 : f32
    %71 = vector.broadcast %cst_37 : f32 to vector<8x16xf32>
    %72 = arith.cmpf ogt, %70, %71 : vector<8x16xf32>
    %cst_38 = arith.constant 2.000000e+01 : f32
    %73 = vector.broadcast %cst_38 : f32 to vector<8x16xf32>
    %74 = arith.minimumf %70, %73 : vector<8x16xf32>
    %75 = math.exp %74 : vector<8x16xf32>
    %76 = math.log1p %75 : vector<8x16xf32>
    %77 = arith.select %72, %70, %76 : vector<8x16xi1>, vector<8x16xf32>
    %cst_39 = arith.constant 5.000000e-01 : f32
    %78 = vector.broadcast %cst_39 : f32 to vector<8x16xf32>
    %79 = arith.mulf %78, %77 : vector<8x16xf32>
    %80 = math.exp %79 : vector<8x16xf32>
    %81 = arith.mulf %80, %1 : vector<8x16xf32>
    %82 = arith.addf %69, %81 : vector<8x16xf32>
    %c0_40 = arith.constant 0 : index
    %c0_41 = arith.constant 0 : index
    %83 = vector.load %arg12[%c0_40, %c0_41] : memref<8x16xf32, #tpu.memory_space<vmem>>, vector<8x16xf32>
    tpu.vector_store %arg12[%c0_40, %c0_41], %82 {strides = array<i32>} : memref<8x16xf32, #tpu.memory_space<vmem>>, vector<8x16xf32>,
    %c0_42 = arith.constant 0 : index
    %c0_43 = arith.constant 0 : index
    %84 = vector.load %arg13[%c0_42, %c0_43] : memref<8x16xf32, #tpu.memory_space<vmem>>, vector<8x16xf32>
    tpu.vector_store %arg13[%c0_42, %c0_43], %69 {strides = array<i32>} : memref<8x16xf32, #tpu.memory_space<vmem>>, vector<8x16xf32>,
    %c0_44 = arith.constant 0 : index
    %c0_45 = arith.constant 0 : index
    %85 = vector.load %arg14[%c0_44, %c0_45] : memref<8x16xf32, #tpu.memory_space<vmem>>, vector<8x16xf32>
    tpu.vector_store %arg14[%c0_44, %c0_45], %77 {strides = array<i32>} : memref<8x16xf32, #tpu.memory_space<vmem>>, vector<8x16xf32>,
    return
  }
}

</mosaic_0001>

<bundles_post_ra>
// kernel: _lambda_.1
= control target key start
LH: loop header
LB: loop body
LE: loop exit
PB: predicated region body
PF: predicated region fallthrough
CT: control target
= control target key end

     0   :  { %20 = vsyncpa [#allocation3], 0  ;;  %s1033_s0 = inlined_call_operand.hbm [shape: f32[8,32], index: 0, kind: input, shape index: {}]   ;;  %s1034_s1 = inlined_call_operand.hbm [shape: f32[8,16], index: 1, kind: input, shape index: {}]   ;;  %s1035_s2 = inlined_call_operand.hbm [shape: f32[32,64], index: 2, kind: input, shape index: {}]   ;;  %s1036_s3 = inlined_call_operand.vmem [shape: f32[1,64], index: 3, kind: input, shape index: {}, may-alias: {3,5}]   ;;  %s1037_s4 = inlined_call_operand.vmem [shape: f32[1,64], index: 4, kind: input, shape index: {}]   ;;  %s1038_s5 = inlined_call_operand.vmem [shape: f32[1,64], index: 5, kind: input, shape index: {}, may-alias: {3,5}]   ;;  %s1039_s6 = inlined_call_operand.hbm [shape: f32[64,32], index: 6, kind: input, shape index: {}]   ;;  %s1040_s7 = inlined_call_operand.vmem [shape: f32[1,32], index: 7, kind: input, shape index: {}, may-alias: {7,9,11}]   ;;  %s1041_s8 = inlined_call_operand.vmem [shape: f32[1,32], index: 8, kind: input, shape index: {}]   ;;  %s1042_s9 = inlined_call_operand.vmem [shape: f32[1,32], index: 9, kind: input, shape index: {}, may-alias: {7,9,11}]   ;;  %s1043_s10 = inlined_call_operand.vmem [shape: f32[32,32], index: 10, kind: input, shape index: {}]   ;;  %s1044_s11 = inlined_call_operand.vmem [shape: f32[1,32], index: 11, kind: input, shape index: {}, may-alias: {7,9,11}]   ;;  %s1045_s12 = inlined_call_operand.hbm [shape: f32[8,16], index: 12, kind: output, shape index: {0}]   ;;  %s1046_s13 = inlined_call_operand.hbm [shape: f32[8,16], index: 13, kind: output, shape index: {1}]   ;;  %s1047_s14 = inlined_call_operand.hbm [shape: f32[8,16], index: 14, kind: output, shape index: {2}]  }
   0x1   :  { %21 = vsyncpa [#allocation6], 0 }
   0x2   :  { %22 = vsyncpa [#allocation9], 0 }
   0x3   :  { %23 = vsyncpa [#allocation4], 0 }
   0x4   :  { %24 = vsyncpa [#allocation12], 0  ;;  %s799_s29 = smov [#allocation5]   ;;  %s800_s15 = smov [#allocation2]  }
   0x5   :  { %s41_s30 = sshll.u32 %s799_s29, 4  ;;  %s31_s16 = sshll.u32 %s800_s15, 4  ;;  %s42_s30 = int_to_ptr.vmem [resolvable:$true] %s41_s30  ;;  %s32_s16 = int_to_ptr.vmem [resolvable:$true] %s31_s16 }
   0x6   :  { %s635_s19 = scalar_lea.hbm %s1034_s1, 128 }
   0x7   :  { %p636_p0 = scmp.ne.s32.totalorder %s1034_s1, %s635_s19  ;;  %p639_p1 = scmp.lt.u32.totalorder %s635_s19, %s1034_s1 }
   0x9   :  { %p641_p2 = pnand %p639_p1, %p636_p0 }
   0xb   :  { %644 = shalt.err (!%p641_p2)
}
   0xc   :  { %s645_s24 = scalar_lea.vmem %s42_s30, 128  ;;  %p650_p4 = scmp.lt.s32.totalorder %s42_s30, %s42_s30 }
   0xd   :  { %p646_p3 = scmp.ne.s32.totalorder %s42_s30, %s645_s24  ;;  %p651_p5 = scmp.lt.s32.totalorder %s645_s24, %s645_s24 }
   0xf   :  { %p652_p6 = por %p651_p5, %p650_p4 }
  0x11   :  { %p653_p7 = pnand %p652_p6, %p646_p3 }
  0x13   :  { %656 = shalt.err (!%p653_p7)
}
  0x14   :  { %44 = dma.hbm_to_vmem [thread:$0]  %s1034_s1, 128, %s42_s30, [#allocation6]  }
  0x15   :  { %s657_s29 = scalar_lea.hbm %s1033_s0, 128 }
  0x16   :  { %p658_p8 = scmp.ne.s32.totalorder %s1033_s0, %s657_s29  ;;  %p661_p9 = scmp.lt.u32.totalorder %s657_s29, %s1033_s0 }
  0x18   :  { %p663_p10 = pnand %p661_p9, %p658_p8 }
  0x1a   :  { %666 = shalt.err (!%p663_p10)
}
  0x1b   :  { %s667_s20 = scalar_lea.vmem %s32_s16, 128  ;;  %p672_p12 = scmp.lt.s32.totalorder %s32_s16, %s32_s16 }
  0x1c   :  { %p668_p11 = scmp.ne.s32.totalorder %s32_s16, %s667_s20  ;;  %p673_p13 = scmp.lt.s32.totalorder %s667_s20, %s667_s20 }
  0x1e   :  { %p674_p0 = por %p673_p13, %p672_p12 }
  0x20   :  { %p675_p1 = pnand %p674_p0, %p668_p11 }
  0x22   :  { %678 = shalt.err (!%p675_p1)
}
  0x23   :  { %34 = dma.hbm_to_vmem [thread:$0]  %s1033_s0, 128, %s32_s16, [#allocation3]  }
  0x24   :  { %s801_s21 = smov [#allocation7]   ;;  %s679_s25 = scalar_lea.hbm %s1035_s2, 512 }
  0x25   :  { %s50_s22 = sshll.u32 %s801_s21, 4  ;;  %p680_p2 = scmp.ne.s32.totalorder %s1035_s2, %s679_s25  ;;  %s51_s22 = int_to_ptr.vmem [resolvable:$true] %s50_s22 }
  0x26   :  { %p683_p3 = scmp.lt.u32.totalorder %s679_s25, %s1035_s2 }
  0x28   :  { %p685_p4 = pnand %p683_p3, %p680_p2 }
  0x2a   :  { %688 = shalt.err (!%p685_p4)
}
  0x2b   :  { %s689_s15 = scalar_lea.vmem %s51_s22, 512  ;;  %p694_p6 = scmp.lt.s32.totalorder %s51_s22, %s51_s22 }
  0x2c   :  { %p690_p5 = scmp.ne.s32.totalorder %s51_s22, %s689_s15  ;;  %p695_p7 = scmp.lt.s32.totalorder %s689_s15, %s689_s15 }
  0x2e   :  { %p696_p8 = por %p695_p7, %p694_p6 }
  0x30   :  { %p697_p9 = pnand %p696_p8, %p690_p5 }
  0x32   :  { %700 = shalt.err (!%p697_p9)
}
  0x33   :  { %s802_s0 = smov 128   ;;  %s803_s16 = smov 8  }
  0x34   :  { %56 = dma.hbm_to_vmem [thread:$0]  %s1035_s2, 512, %s51_s22, [#allocation6], %s802_s0, %s802_s0, %s803_s16  }
  0x35   :  { %s804_s19 = smov [#allocation8]   ;;  %s701_s21 = scalar_lea.hbm %s1039_s6, 1024 }
  0x36   :  { %s68_s20 = sshll.u32 %s804_s19, 4  ;;  %p702_p10 = scmp.ne.s32.totalorder %s1039_s6, %s701_s21  ;;  %s69_s20 = int_to_ptr.vmem [resolvable:$true] %s68_s20 }
  0x37   :  { %p705_p11 = scmp.lt.u32.totalorder %s701_s21, %s1039_s6 }
  0x39   :  { %p707_p12 = pnand %p705_p11, %p702_p10 }
  0x3b   :  { %710 = shalt.err (!%p707_p12)
}
  0x3c   :  { %s711_s27 = scalar_lea.vmem %s69_s20, 1024  ;;  %p716_p0 = scmp.lt.s32.totalorder %s69_s20, %s69_s20 }
  0x3d   :  { %p712_p13 = scmp.ne.s32.totalorder %s69_s20, %s711_s27  ;;  %p717_p1 = scmp.lt.s32.totalorder %s711_s27, %s711_s27 }
  0x3f   :  { %p718_p2 = por %p717_p1, %p716_p0 }
  0x41   :  { %p719_p3 = pnand %p718_p2, %p712_p13 }
  0x43   :  { %722 = shalt.err (!%p719_p3)
}
  0x44   :  { %74 = dma.hbm_to_vmem [thread:$0]  %s1039_s6, 1024, %s69_s20, [#allocation9], %s802_s0, %s802_s0, %s803_s16  }
  0x45   :  { %789 = dma.done.wait [#allocation3], 128  }
  0x46   :  { %790 = vsyncadd [#allocation3], 4294967168 }
  0x47   :  { %791 = dma.done.wait [#allocation6], 640  }
  0x48   :  { %792 = vsyncadd [#allocation6], 4294966656 }
  0x49   :  { %793 = dma.done.wait [#allocation9], 1024  }
  0x4a   :  { %794 = vsyncadd [#allocation9], 4294966272  ;;  %v805_v0 = vmov 0.0|0.0   ;;  %vm806_vm0 = vmmov 0   ;;  %v807_v1 = vmov 0.0   ;;  %v99_v2 = vld [vmem:[#allocation7] sm:$0xff] }
  0x4b   :  { %587 = vmatprep.subr.bf16.mxu0 %v805_v0  ;;  %554 = vmatprep.mubr.msk.f32.mxu0 %vm806_vm0, %v807_v1  ;;  %v100_v3 = vld [vmem:[#allocation7 + $0x8] sm:$0xff]  ;;  %v101_v4 = vld [vmem:[#allocation7 + $0x10] sm:$0xff]  ;;  %v102_v6 = vld [vmem:[#allocation7 + $0x18] sm:$0xff]  ;;  %vm110_vm1 = vcmask 261120   ;;  %vm196_vm2 = vcmask 523264   ;;  %s808_s30 = smov 16  }
  0x4c   :  { %593 = vmatprep.subr.bf16.mxu1 %v805_v0  ;;  %573 = vmatprep.mubr.msk.f32.mxu1 %vm806_vm0, %v807_v1  ;;  %v588_v5 = vpack.c.bf16 %v100_v3, %v99_v2  ;;  %v591_v7 = vpack.c.bf16 %v102_v6, %v101_v4  ;;  %v97_v8 = vld [vmem:[#allocation2] sm:$0xff]  ;;  %v186_v9 = vld [vmem:[#allocation8] sm:$0xff]  ;;  %v187_v10 = vld [vmem:[#allocation8 + $0x8] sm:$0xff]  ;;  %vm465_vm3 = vcmask 130048  }
  0x4d   :  { %v188_v11 = vld [vmem:[#allocation8 + $0x10] sm:$0xff]  ;;  %v594_v12 = vpack.c.bf16 %v187_v10, %v186_v9  ;;  %v189_v13 = vld [vmem:[#allocation8 + $0x18] sm:$0xff]  ;;  %v190_v15 = vld [vmem:[#allocation8 + $0x20] sm:$0xff] }
  0x4e   :  { %589 = vmatpush3.bf16.msra.mxu0 %v588_v5  ;;  %v597_v14 = vpack.c.bf16 %v189_v13, %v188_v11  ;;  %v191_v16 = vld [vmem:[#allocation8 + $0x28] sm:$0xff]  ;;  %v192_v18 = vld [vmem:[#allocation8 + $0x30] sm:$0xff]  ;;  %v193_v19 = vld [vmem:[#allocation8 + $0x38] sm:$0xff] }
  0x4f   :  { %590 = vmatprep.subr.bf16.mxu0 %v805_v0  ;;  %595 = vmatpush3.bf16.msra.mxu1 %v594_v12  ;;  %v600_v17 = vpack.c.bf16 %v191_v16, %v190_v15  ;;  %v603_v20 = vpack.c.bf16 %v193_v19, %v192_v18  ;;  %v517_v21 = vld [vmem:[%s1036_s3] ss:$0 sm:$0xff]  ;;  %v355_v54 = vld [vmem:[%s1043_s10 + $0x8] sm:$0xff]  ;;  %v356_v56 = vld [vmem:[%s1043_s10 + $0x10] sm:$0xff] }
  0x50   :  { %596 = vmatprep.subr.bf16.mxu1 %v805_v0  ;;  %v519_v48 = vld [vmem:[%s1037_s4] ss:$0 sm:$0xff]  ;;  %v357_v57 = vld [vmem:[%s1043_s10 + $0x18] sm:$0xff]  ;;  %v98_v59 = vld [vmem:[#allocation5] sm:$0xff] }
  0x51   :  { %v520_v50 = vld [vmem:[%s1038_s5] ss:$0 sm:$0xff]  ;;  %v609_v58 = vpack.c.bf16 %v357_v57, %v356_v56  ;;  %456 = vrot.lane.b32.xlu0 %v98_v59, %s808_s30 }
  0x52   :  { %592 = vmatpush3.bf16.msra.mxu0 %v591_v7  ;;  %v354_v53 = vld [vmem:[%s1043_s10] sm:$0xff] }
  0x53   :  { %605 = vmatprep.subr.bf16.mxu0 %v805_v0  ;;  %598 = vmatpush3.bf16.msra.mxu1 %v597_v14  ;;  %v606_v55 = vpack.c.bf16 %v355_v54, %v354_v53  ;;  %v521_v60 = vld [vmem:[%s1040_s7] ss:$0 sm:$0xff] }
  0x54   :  { %599 = vmatprep.subr.bf16.mxu1 %v805_v0 }
  0x55   :  { %555 = vmatmul.mubr.msk.f32.vlgmr.msra.gmra.mrb[0].mxu0 %vm110_vm1, %v97_v8 }
  0x56   :  { %584 = vmatprep.mubr.msk.f32.mxu0 %vm806_vm0, %v807_v1  ;;  %607 = vmatpush3.bf16.msra.mxu0 %v606_v55 }
  0x57   :  { %601 = vmatpush3.bf16.msra.mxu1 %v600_v17  ;;  %608 = vmatprep.subr.bf16.mxu0 %v805_v0 }
  0x58   :  { %602 = vmatprep.subr.bf16.mxu1 %v805_v0 }
  0x5a   :  { %610 = vmatpush3.bf16.msra.mxu0 %v609_v58 }
  0x5b   :  { %604 = vmatpush3.bf16.msra.mxu1 %v603_v20 }
 0x128   :  { %v180_v22 = vpop.f32.mrb[0].mxu0 }
 0x129   :  { %v181_v23 = vadd.f32 %v517_v21, %v180_v22  ;;  %v556_v24 = vpop.f32.mrb[1].mxu0 }
 0x12b   :  { %v195_v25 = vmax.f32 %v181_v23, 0.0  ;;  %v523_v23 = vld [vmem:[%s1041_s8] ss:$0 sm:$0xff]  ;;  %s809_s8 = smov 112  }
 0x12d   :  { %v206_v26 = vmul.f32 %v195_v25, %v195_v25  ;;  %v197_v27 = vsel %vm196_vm2, %v195_v25, 0.0 }
 0x12e   :  { %v198_v28 = vrot.slane %v197_v27, 4 }
 0x12f   :  { %v207_v29 = vsel %vm196_vm2, %v206_v26, 0.0 }
 0x130   :  { %v199_v30 = vadd.f32 %v198_v28, %v197_v27  ;;  %v208_v31 = vrot.slane %v207_v29, 4  ;;  %v525_v28 = vld [vmem:[%s1044_s11] ss:$0 sm:$0xff] }
 0x132   :  { %v200_v32 = vrot.slane %v199_v30, 2  ;;  %v209_v33 = vadd.f32 %v208_v31, %v207_v29 }
 0x134   :  { %v201_v34 = vadd.f32 %v200_v32, %v199_v30  ;;  %v210_v35 = vrot.slane %v209_v33, 2 }
 0x136   :  { %v202_v36 = vrot.slane %v201_v34, 1  ;;  %v211_v37 = vadd.f32 %v210_v35, %v209_v33 }
 0x138   :  { %v203_v38 = vadd.f32 %v202_v36, %v201_v34  ;;  %v212_v39 = vrot.slane %v211_v37, 1 }
 0x13a   :  { %v205_v40 = vmul.f32 0.125, %v203_v38  ;;  %v213_v41 = vadd.f32 %v212_v39, %v211_v37 }
 0x13c   :  { %v214_v42 = vmul.f32 0.125, %v213_v41  ;;  %v215_v43 = vmul.f32 %v205_v40, %v205_v40  ;;  %v217_v46 = vsub.f32 %v195_v25, %v205_v40  ;;  %v524_v25 = vld [vmem:[%s1042_s9] ss:$0 sm:$0xff]  ;;  %s810_s9 = smov [#allocation11]  }
 0x13d   :  { %s489_s11 = sshll.u32 %s810_s9, 4  ;;  %s490_s11 = int_to_ptr.vmem [resolvable:$true] %s489_s11 }
 0x13e   :  { %v216_v44 = vsub.f32 %v214_v42, %v215_v43  ;;  %s723_s2 = scalar_lea.vmem %s490_s11, 128  ;;  %p728_p5 = scmp.lt.s32.totalorder %s490_s11, %s490_s11 }
 0x13f   :  { %p724_p4 = scmp.ne.s32.totalorder %s490_s11, %s723_s2  ;;  %p729_p6 = scmp.lt.s32.totalorder %s723_s2, %s723_s2 }
 0x140   :  { %v218_v45 = vadd.f32 1e-05, %v216_v44 }
 0x141   :  { %p730_p7 = por %p729_p6, %p728_p5 }
 0x142   :  { %625 = vrsqrt.f32 %v218_v45 }
 0x143   :  { %p731_p8 = pnand %p730_p7, %p724_p4 }
 0x14c   :  { %v626_v47 = vpop.eup %625 }
 0x14d   :  { %v220_v49 = vmul.f32 %v626_v47, %v217_v46 }
 0x14f   :  { %v227_v51 = vmul.f32 %v519_v48, %v220_v49 }
 0x151   :  { %v234_v52 = vadd.f32 %v520_v50, %v227_v51 }
 0x153   :  { %574 = vmatmul.mubr.msk.f32.vlgmr.msra.gmra.mrb[0].mxu1 %vm196_vm2, %v234_v52 }
 0x226   :  { %v310_v61 = vpop.f32.mrb[0].mxu1 }
 0x227   :  { %v311_v62 = vadd.f32 %v521_v60, %v310_v61  ;;  %v575_v63 = vpop.f32.mrb[1].mxu1 }
 0x229   :  { %v316_v0 = vmax.f32 %v311_v62, 0.0 }
 0x22b   :  { %v317_v1 = vsel %vm110_vm1, %v316_v0, 0.0  ;;  %v325_v2 = vmul.f32 %v316_v0, %v316_v0 }
 0x22c   :  { %v318_v3 = vrot.slane %v317_v1, 4 }
 0x22d   :  { %v326_v4 = vsel %vm110_vm1, %v325_v2, 0.0 }
 0x22e   :  { %v319_v5 = vadd.f32 %v318_v3, %v317_v1  ;;  %v327_v6 = vrot.slane %v326_v4, 4 }
 0x230   :  { %v320_v7 = vrot.slane %v319_v5, 2  ;;  %v328_v8 = vadd.f32 %v327_v6, %v326_v4 }
 0x232   :  { %v321_v9 = vadd.f32 %v320_v7, %v319_v5  ;;  %v329_v10 = vrot.slane %v328_v8, 2 }
 0x234   :  { %v322_v11 = vrot.slane %v321_v9, 1  ;;  %v330_v12 = vadd.f32 %v329_v10, %v328_v8 }
 0x236   :  { %v323_v13 = vadd.f32 %v322_v11, %v321_v9  ;;  %v331_v14 = vrot.slane %v330_v12, 1 }
 0x238   :  { %v324_v15 = vmul.f32 0.125, %v323_v13  ;;  %v332_v16 = vadd.f32 %v331_v14, %v330_v12 }
 0x23a   :  { %v333_v17 = vmul.f32 0.125, %v332_v16  ;;  %v334_v18 = vmul.f32 %v324_v15, %v324_v15  ;;  %v336_v21 = vsub.f32 %v316_v0, %v324_v15 }
 0x23c   :  { %v335_v19 = vsub.f32 %v333_v17, %v334_v18 }
 0x23e   :  { %v337_v20 = vadd.f32 1e-05, %v335_v19 }
 0x240   :  { %627 = vrsqrt.f32 %v337_v20 }
 0x24a   :  { %v628_v22 = vpop.eup %627 }
 0x24b   :  { %v339_v24 = vmul.f32 %v628_v22, %v336_v21 }
 0x24d   :  { %v346_v26 = vmul.f32 %v523_v23, %v339_v24 }
 0x24f   :  { %v353_v27 = vadd.f32 %v524_v25, %v346_v26 }
 0x251   :  { %585 = vmatmul.mubr.msk.f32.vlgmr.msra.gmra.mrb[2].mxu0 %vm110_vm1, %v353_v27 }
 0x324   :  { %v434_v29 = vpop.f32.mrb[2].mxu0 }
 0x325   :  { %v987_v30 = vadd.f32 %v525_v28, %v434_v29  ;;  %v586_v31 = vpop.f32.mrb[3].mxu0 }
 0x327   :  { %v439_v32 = vmin.f32 %v987_v30, 20.0  ;;  %467 = vst.msk [vmem:[#allocation11] sm:$0xff] %vm465_vm3, %v987_v30  ;;  %vm438_vm5 = vcmp.gt.f32.partialorder %v987_v30, 20.0 }
 0x329   :  { %v440_v33 = vmul.f32 1.442695, %v439_v32 }
 0x32b   :  { %629 = vpow2.f32 %v440_v33 }
 0x335   :  { %v630_v34 = vpop.eup %629 }
 0x336   :  { %v442_v35 = vadd.f32 1.0, %v630_v34  ;;  %v445_v36 = vmul.f32 -0.5, %v630_v34  ;;  %v448_v38 = vand.u32 2147483647, %v630_v34 }
 0x338   :  { %631 = vlog2.f32 %v442_v35  ;;  %v446_v37 = vadd.f32 1.0, %v445_v36  ;;  %vm449_vm4 = vcmp.lt.f32.partialorder %v448_v38, 0.0004427343 }
 0x33a   :  { %v447_v41 = vmul.f32 %v630_v34, %v446_v37 }
 0x342   :  { %v632_v39 = vpop.eup %631 }
 0x343   :  { %v444_v40 = vmul.f32 0.6931472, %v632_v39 }
 0x345   :  { %v450_v42 = vsel %vm449_vm4, %v447_v41, %v444_v40 }
 0x346   :  { %v451_v43 = vsel %vm438_vm5, %v987_v30, %v450_v42 }
 0x347   :  { %469 = vrot.lane.b32.xlu1 %v451_v43, %s809_s8  ;;  %v452_v44 = vmul.f32 0.5, %v451_v43 }
 0x349   :  { %v453_v45 = vmul.f32 1.442695, %v452_v44 }
 0x34b   :  { %633 = vpow2.f32 %v453_v45 }
 0x34c   :  { %734 = shalt.err (!%p731_p8)
}
 0x34d   :  { %s735_s28 = scalar_lea.hbm %s1046_s13, 128 }
 0x34e   :  { %p736_p9 = scmp.ne.s32.totalorder %s1046_s13, %s735_s28  ;;  %p739_p10 = scmp.lt.u32.totalorder %s735_s28, %s1046_s13 }
 0x350   :  { %p741_p11 = pnand %p739_p10, %p736_p9 }
 0x352   :  { %744 = shalt.err (!%p741_p11)
}
 0x353   :  { %492 = dma.vmem_to_hbm [thread:$0]  %s490_s11, 128, %s1046_s13, [#allocation12]   ;;  %v457_v46 = vpop.permute.xlu0 %456 }
 0x354   :  { %s811_s18 = smov [#allocation13]  }
 0x355   :  { %v634_v47 = vpop.eup %633  ;;  %s499_s19 = sshll.u32 %s811_s18, 4  ;;  %s500_s19 = int_to_ptr.vmem [resolvable:$true] %s499_s19 }
 0x356   :  { %v459_v48 = vmul.f32 %v634_v47, %v457_v46  ;;  %s745_s4 = scalar_lea.vmem %s500_s19, 128  ;;  %p750_p13 = scmp.lt.s32.totalorder %s500_s19, %s500_s19 }
 0x357   :  { %p746_p12 = scmp.ne.s32.totalorder %s500_s19, %s745_s4  ;;  %p751_p0 = scmp.lt.s32.totalorder %s745_s4, %s745_s4 }
 0x358   :  { %461 = vrot.lane.b32.xlu0 %v459_v48, %s809_s8 }
 0x359   :  { %p752_p1 = por %p751_p0, %p750_p13 }
 0x35b   :  { %p753_p2 = pnand %p752_p1, %p746_p12 }
 0x3b9   :  { %v470_v49 = vpop.permute.xlu1 %469 }
 0x3ba   :  { %472 = vst.msk [vmem:[#allocation13] sm:$0xff] %vm465_vm3, %v470_v49 }
 0x3bb   :  { %756 = shalt.err (!%p753_p2)
}
 0x3bc   :  { %s757_s13 = scalar_lea.hbm %s1047_s14, 128 }
 0x3bd   :  { %p758_p3 = scmp.ne.s32.totalorder %s1047_s14, %s757_s13  ;;  %p761_p4 = scmp.lt.u32.totalorder %s757_s13, %s1047_s14 }
 0x3bf   :  { %p763_p5 = pnand %p761_p4, %p758_p3 }
 0x3c1   :  { %766 = shalt.err (!%p763_p5)
}
 0x3c2   :  { %502 = dma.vmem_to_hbm [thread:$0]  %s500_s19, 128, %s1047_s14, [#allocation12]  }
 0x3c3   :  { %s812_s24 = smov [#allocation10]  }
 0x3c4   :  { %s479_s25 = sshll.u32 %s812_s24, 4  ;;  %s480_s25 = int_to_ptr.vmem [resolvable:$true] %s479_s25 }
 0x3c5   :  { %s767_s26 = scalar_lea.vmem %s480_s25, 128  ;;  %p772_p7 = scmp.lt.s32.totalorder %s480_s25, %s480_s25 }
 0x3c6   :  { %p768_p6 = scmp.ne.s32.totalorder %s480_s25, %s767_s26  ;;  %p773_p8 = scmp.lt.s32.totalorder %s767_s26, %s767_s26 }
 0x3c8   :  { %p774_p9 = por %p773_p8, %p772_p7 }
 0x3ca   :  { %v462_v50 = vpop.permute.xlu0 %461  ;;  %p775_p10 = pnand %p774_p9, %p768_p6 }
 0x3cb   :  { %v464_v51 = vadd.f32 %v462_v50, %v987_v30 }
 0x3cd   :  { %466 = vst.msk [vmem:[#allocation10] sm:$0xff] %vm465_vm3, %v464_v51 }
 0x3ce   :  { %778 = shalt.err (!%p775_p10)
}
 0x3cf   :  { %s779_s9 = scalar_lea.hbm %s1045_s12, 128 }
 0x3d0   :  { %p780_p11 = scmp.ne.s32.totalorder %s1045_s12, %s779_s9  ;;  %p783_p12 = scmp.lt.u32.totalorder %s779_s9, %s1045_s12 }
 0x3d2   :  { %p785_p13 = pnand %p783_p12, %p780_p11 }
 0x3d4   :  { %788 = shalt.err (!%p785_p13)
}
 0x3d5   :  { %482 = dma.vmem_to_hbm [thread:$0]  %s480_s25, 128, %s1045_s12, [#allocation4]  }
 0x3d6   :  { %795 = dma.done.wait [#allocation4], 128  }
 0x3d7   :  { %796 = vsyncadd [#allocation4], 4294967168 }
 0x3d8   :  { %797 = dma.done.wait [#allocation12], 256  }
 0x3d9   :  { %798 = vsyncadd [#allocation12], 4294967040 }
 0x3da   :  { %512 = vsyncpa [#allocation3], 1 }
 0x3db   :  { %513 = vsyncpa [#allocation6], 1 }
 0x3dc   :  { %514 = vsyncpa [#allocation9], 1 }
 0x3dd   :  { %515 = vsyncpa [#allocation4], 1 }
 0x3de   :  { %516 = vsyncpa [#allocation12], 1 }

</bundles_post_ra>
